<compile_context>
chip_gen: v7x
topology: tpu7x:2x2x1
jax: 0.10.0
libtpu: 0.0.40
codegen_flags: <defaults>
</compile_context>

<pallas_src>
import functools

import jax
import jax.numpy as jnp
from jax.experimental import pallas as pl
from jax.experimental.pallas import tpu as pltpu


def basic_rnn_kernel(x_ref, h0_ref, w1_ref, b1_ref, wg_ref, bg_ref,
                     w2_ref, b2_ref, out_ref, h_scr, *, hidden_dim):
    """One timestep per grid step. h is carried in VMEM scratch across steps."""
    H = hidden_dim
    t = pl.program_id(0)

    @pl.when(t == 0)
    def _():
        h_scr[...] = h0_ref[...]

    x = x_ref[...]                       # (B, Din)  -- T dim squeezed by BlockSpec
    h = h_scr[...]                       # (B, H)    -- carried recurrent state (f32)

    # fc1 + ReLU  (MXU push 1)
    x1 = jnp.maximum(
        jnp.dot(x, w1_ref[...], preferred_element_type=jnp.float32) + b1_ref[...],
        0.0)

    # Fused GRU gates, no lane concat: two MXU pushes on static ref views.
    # Column layout of the 4H = 128-lane gate slab:
    #   [ r | z | (W_in x + b_in) | (W_hn h + b_hn) ]
    g = (jnp.dot(x1, wg_ref[:H, :], preferred_element_type=jnp.float32)
         + jnp.dot(h, wg_ref[H:, :], preferred_element_type=jnp.float32)
         + bg_ref[...])                                                  # (B, 4H)

    rz = jax.nn.sigmoid(g[:, :2 * H])    # one EUP dispatch covers r and z
    r = rz[:, :H]
    z = rz[:, H:]
    n = jnp.tanh(g[:, 2 * H:3 * H] + r * g[:, 3 * H:4 * H])
    h_new = (1.0 - z) * n + z * h        # (B, H), exact f32 recurrence

    h_scr[...] = h_new                   # carry to next grid step

    # fc2 with identity-augmented weight: one MXU push directly emits the
    # lane-dense packed slab [q_pad | h_new]; single unmasked 128-lane store.
    out_ref[...] = (jnp.dot(h_new, w2_ref[...], preferred_element_type=jnp.float32)
                    + b2_ref[...]).astype(out_ref.dtype)


def make_params(key, input_shape, output_shape, hidden_dim):
    """Deterministic synthetic parameters in PyTorch (out, in) layout."""
    ks = jax.random.split(key, 8)
    scale = 0.1
    return {
        "fc1_w": jax.random.normal(ks[0], (hidden_dim, input_shape), jnp.float32) * scale,
        "fc1_b": jax.random.normal(ks[1], (hidden_dim,), jnp.float32) * scale,
        "gru_w_ih": jax.random.normal(ks[2], (3 * hidden_dim, hidden_dim), jnp.float32) * scale,
        "gru_w_hh": jax.random.normal(ks[3], (3 * hidden_dim, hidden_dim), jnp.float32) * scale,
        "gru_b_ih": jax.random.normal(ks[4], (3 * hidden_dim,), jnp.float32) * scale,
        "gru_b_hh": jax.random.normal(ks[5], (3 * hidden_dim,), jnp.float32) * scale,
        "fc2_w": jax.random.normal(ks[6], (output_shape, hidden_dim), jnp.float32) * scale,
        "fc2_b": jax.random.normal(ks[7], (output_shape,), jnp.float32) * scale,
    }


def prep_params(params, hidden_dim):
    """One-time layout prep: transposes, fused GRU block weight, pre-summed r/z
    biases, and an identity-augmented / zero-padded fc2 so the output slab is a
    128-lane-dense [q_pad | h_new] pack."""
    H = hidden_dim
    out_dim = params["fc2_w"].shape[0]
    f32 = jnp.float32

    # fc1: (out,in) -> (in,out)
    w1 = params["fc1_w"].T.astype(f32)                         # (Din, H)
    b1 = params["fc1_b"].reshape(1, H).astype(f32)

    # GRU (PyTorch gate order [r, z, n] along rows of weight_ih / weight_hh).
    w_ih_t = params["gru_w_ih"].T                               # (H, 3H)
    w_hh_t = params["gru_w_hh"].T                               # (H, 3H)
    b_ih = params["gru_b_ih"]
    b_hh = params["gru_b_hh"]

    zeros_hh = jnp.zeros((H, H), f32)
    top = jnp.concatenate([w_ih_t[:, :2 * H], w_ih_t[:, 2 * H:], zeros_hh], axis=1)  # (H, 4H)
    bot = jnp.concatenate([w_hh_t[:, :2 * H], zeros_hh, w_hh_t[:, 2 * H:]], axis=1)  # (H, 4H)
    w_gru = jnp.concatenate([top, bot], axis=0).astype(f32)                          # (2H, 4H)
    b_gru = jnp.concatenate(
        [b_ih[:2 * H] + b_hh[:2 * H],   # r/z biases pre-summed
         b_ih[2 * H:],                  # b_in
         b_hh[2 * H:]]                  # b_hn (stays inside the r*(...) term)
    ).reshape(1, 4 * H).astype(f32)

    # fc2, zero-padded to q_pad lanes and identity-augmented with I_H in columns
    # P..P+H so fc2 @ h_new directly produces [q_pad | h_new] (slab width % 128 == 0).
    slab = ((out_dim + H + 127) // 128) * 128
    q_pad = slab - H
    w2 = params["fc2_w"].T                                      # (H, out_dim)
    w2_aug = jnp.zeros((H, slab), f32)
    w2_aug = w2_aug.at[:, :out_dim].set(w2)
    w2_aug = w2_aug.at[:, q_pad:].set(jnp.eye(H, dtype=f32))    # pass-through of h_new
    b2_aug = jnp.zeros((1, slab), f32).at[0, :out_dim].set(params["fc2_b"])

    return {"w1": w1, "b1": b1, "w_gru": w_gru, "b_gru": b_gru,
            "w2": w2_aug, "b2": b2_aug,
            "H": H, "out_dim": out_dim, "q_pad": q_pad, "slab": slab}


def basic_rnn_sequence(xs, h0, prepped):
    """Run T GRU steps in ONE pallas_call.
    xs: (T, B, Din), h0: (..., H).  Returns (q: (T, B, out_dim), h_T: (B, H))."""
    H = prepped["H"]
    out_dim = prepped["out_dim"]
    P = prepped["q_pad"]
    W = prepped["slab"]
    T, B, Din = xs.shape

    xs = xs.astype(jnp.float32)                 # hoisted: once per sequence
    h0 = h0.reshape(-1, H).astype(jnp.float32)

    const = lambda t: (0, 0)                    # weights: resident, DMA'd once

    flops = T * 2 * B * (Din * H + 2 * H * 4 * H + H * W)
    cost = pl.CostEstimate(
        flops=int(flops),
        transcendentals=int(T * B * 3 * H),
        bytes_accessed=int(4 * (xs.size + h0.size + T * B * W
                                + prepped["w1"].size + prepped["b1"].size
                                + prepped["w_gru"].size + prepped["b_gru"].size
                                + prepped["w2"].size + prepped["b2"].size)))

    out = pl.pallas_call(
        functools.partial(basic_rnn_kernel, hidden_dim=H),
        grid=(T,),
        out_shape=jax.ShapeDtypeStruct((T, B, W), jnp.float32),
        in_specs=[
            pl.BlockSpec((None, B, Din), lambda t: (t, 0, 0)),   # x: stream 1 step
            pl.BlockSpec((B, H), const),                         # h0 (read at t==0)
            pl.BlockSpec(prepped["w1"].shape, const),
            pl.BlockSpec(prepped["b1"].shape, const),
            pl.BlockSpec(prepped["w_gru"].shape, const),
            pl.BlockSpec(prepped["b_gru"].shape, const),
            pl.BlockSpec(prepped["w2"].shape, const),
            pl.BlockSpec(prepped["b2"].shape, const),
        ],
        out_specs=pl.BlockSpec((None, B, W), lambda t: (t, 0, 0)),
        scratch_shapes=[pltpu.VMEM((B, H), jnp.float32)],        # carried h
        compiler_params=pltpu.CompilerParams(
            dimension_semantics=("arbitrary",)),                 # T is sequential
        cost_estimate=cost,
    )(xs, h0, prepped["w1"], prepped["b1"], prepped["w_gru"], prepped["b_gru"],
      prepped["w2"], prepped["b2"])

    q = out[:, :, :out_dim]          # sliced once per sequence
    h_T = out[T - 1, :, P:]
    return q, h_T


def basic_rnn_forward(inputs, hidden_state, prepped):
    """Single-step forward matching the PyTorch module: (q, h_new)."""
    q, h = basic_rnn_sequence(inputs[None], hidden_state, prepped)
    return q[0], h


def reference_forward(inputs, hidden_state, params, hidden_dim):
    """Pure-JAX reference mirroring the PyTorch module."""
    H = hidden_dim
    x = jnp.maximum(inputs @ params["fc1_w"].T + params["fc1_b"], 0.0)
    h = hidden_state.reshape(-1, H)
    gi = x @ params["gru_w_ih"].T + params["gru_b_ih"]
    gh = h @ params["gru_w_hh"].T + params["gru_b_hh"]
    r = jax.nn.sigmoid(gi[:, :H] + gh[:, :H])
    z = jax.nn.sigmoid(gi[:, H:2 * H] + gh[:, H:2 * H])
    n = jnp.tanh(gi[:, 2 * H:] + r * gh[:, 2 * H:])
    h_new = (1.0 - z) * n + z * h
    q = h_new @ params["fc2_w"].T + params["fc2_b"]
    return q, h_new


def reference_sequence(xs, h0, params, hidden_dim):
    def step(h, x):
        q, h_new = reference_forward(x, h, params, hidden_dim)
        return h_new, q
    h_T, qs = jax.lax.scan(step, h0, xs)
    return qs, h_T


if __name__ == "__main__":
    input_shape = 48
    output_shape = 12
    hidden_dim = 32
    batch = 8
    seq_len = 8

    key = jax.random.PRNGKey(0)
    k_param, k_x, k_h, k_seq = jax.random.split(key, 4)

    params = make_params(k_param, input_shape, output_shape, hidden_dim)
    prepped = prep_params(params, hidden_dim)

    # --- Single step (exact PyTorch forward semantics) ---
    inputs = jax.random.normal(k_x, (batch, input_shape), jnp.float32)
    hidden_state = jax.random.normal(k_h, (batch, hidden_dim), jnp.float32)

    q, h_new = basic_rnn_forward(inputs, hidden_state, prepped)
    q, h_new = jax.block_until_ready((q, h_new))
    q_ref, h_ref = reference_forward(inputs, hidden_state, params, hidden_dim)
    assert q.shape == (batch, output_shape) and h_new.shape == (batch, hidden_dim)
    assert jnp.allclose(q, q_ref, atol=1e-4, rtol=1e-4), "q mismatch (single step)"
    assert jnp.allclose(h_new, h_ref, atol=1e-4, rtol=1e-4), "h mismatch (single step)"

    # --- Sequence: T steps inside one pallas_call (internal T loop) ---
    xs = jax.random.normal(k_seq, (seq_len, batch, input_shape), jnp.float32)
    qs, h_T = basic_rnn_sequence(xs, hidden_state, prepped)
    qs, h_T = jax.block_until_ready((qs, h_T))
    qs_ref, hT_ref = reference_sequence(xs, hidden_state, params, hidden_dim)
    assert qs.shape == (seq_len, batch, output_shape) and h_T.shape == (batch, hidden_dim)
    assert jnp.allclose(qs, qs_ref, atol=2e-3, rtol=2e-3), "q mismatch (sequence)"
    assert jnp.allclose(h_T, hT_ref, atol=2e-3, rtol=2e-3), "h mismatch (sequence)"

    print("KERNEL_OK")
</pallas_src>

<mosaic_0001>
module attributes {stable_mosaic.version = 11 : i64} {
  func.func @basic_rnn_kernel(%arg0: i32, %arg1: memref<1x8x48xf32, #tpu.memory_space<vmem>>, %arg2: memref<8x32xf32, #tpu.memory_space<vmem>>, %arg3: memref<48x32xf32, #tpu.memory_space<vmem>>, %arg4: memref<1x32xf32, #tpu.memory_space<vmem>>, %arg5: memref<64x128xf32, #tpu.memory_space<vmem>>, %arg6: memref<1x128xf32, #tpu.memory_space<vmem>>, %arg7: memref<32x128xf32, #tpu.memory_space<vmem>>, %arg8: memref<1x128xf32, #tpu.memory_space<vmem>>, %arg9: memref<1x8x128xf32, #tpu.memory_space<vmem>>, %arg10: memref<8x32xf32, #tpu.memory_space<vmem>>) attributes {dimension_semantics = [#tpu.dimension_semantics<arbitrary>], iteration_bounds = array<i64: 1>, scalar_prefetch = 0 : i64, scratch_operands = 1 : i64, tpu.core_type = #tpu.core_type<tc>, window_params = [{transform_indices = @transform_0, window_bounds = array<i64: 1, 8, 48>}, {pipeline_mode = #tpu.pipeline_mode<synchronous>, transform_indices = @transform_1, window_bounds = array<i64: 8, 32>}, {pipeline_mode = #tpu.pipeline_mode<synchronous>, transform_indices = @transform_2, window_bounds = array<i64: 48, 32>}, {pipeline_mode = #tpu.pipeline_mode<synchronous>, transform_indices = @transform_3, window_bounds = array<i64: 1, 32>}, {pipeline_mode = #tpu.pipeline_mode<synchronous>, transform_indices = @transform_4, window_bounds = array<i64: 64, 128>}, {pipeline_mode = #tpu.pipeline_mode<synchronous>, transform_indices = @transform_5, window_bounds = array<i64: 1, 128>}, {pipeline_mode = #tpu.pipeline_mode<synchronous>, transform_indices = @transform_6, window_bounds = array<i64: 32, 128>}, {pipeline_mode = #tpu.pipeline_mode<synchronous>, transform_indices = @transform_7, window_bounds = array<i64: 1, 128>}, {transform_indices = @transform_8, window_bounds = array<i64: 1, 8, 128>}]} {
    %c0_i32 = arith.constant 0 : i32
    %0 = arith.cmpi eq, %arg0, %c0_i32 : i32
    %1 = arith.extui %0 : i1 to i32
    %c0_i32_0 = arith.constant 0 : i32
    %2 = arith.cmpi ne, %1, %c0_i32_0 : i32
    scf.if %2 {
      %c0_29 = arith.constant 0 : index
      %c0_30 = arith.constant 0 : index
      %48 = vector.load %arg2[%c0_29, %c0_30] : memref<8x32xf32, #tpu.memory_space<vmem>>, vector<8x32xf32>
      %c0_31 = arith.constant 0 : index
      %c0_32 = arith.constant 0 : index
      %49 = vector.load %arg10[%c0_31, %c0_32] : memref<8x32xf32, #tpu.memory_space<vmem>>, vector<8x32xf32>
      tpu.vector_store %arg10[%c0_31, %c0_32], %48 {strides = array<i32>} : memref<8x32xf32, #tpu.memory_space<vmem>>, vector<8x32xf32>,
    } else {
    }
    %c0 = arith.constant 0 : index
    %c0_1 = arith.constant 0 : index
    %c0_2 = arith.constant 0 : index
    %3 = vector.load %arg1[%c0, %c0_1, %c0_2] : memref<1x8x48xf32, #tpu.memory_space<vmem>>, vector<1x8x48xf32>
    %4 = vector.shape_cast %3 : vector<1x8x48xf32> to vector<8x48xf32>
    %c0_3 = arith.constant 0 : index
    %c0_4 = arith.constant 0 : index
    %5 = vector.load %arg10[%c0_3, %c0_4] : memref<8x32xf32, #tpu.memory_space<vmem>>, vector<8x32xf32>
    %c0_5 = arith.constant 0 : index
    %c0_6 = arith.constant 0 : index
    %6 = vector.load %arg3[%c0_5, %c0_6] : memref<48x32xf32, #tpu.memory_space<vmem>>, vector<48x32xf32>
    %cst = arith.constant dense<0.000000e+00> : vector<8x32xf32>
    %7 = tpu.matmul %4, %6, %cst {dimension_numbers = #tpu.dot_dimension_numbers<[1], [0], [0], [1], [0, 0, 1, 1], [], []>} : vector<8x48xf32>, vector<48x32xf32>, vector<8x32xf32> -> vector<8x32xf32>
    %c0_7 = arith.constant 0 : index
    %c0_8 = arith.constant 0 : index
    %8 = vector.load %arg4[%c0_7, %c0_8] : memref<1x32xf32, #tpu.memory_space<vmem>>, vector<1x32xf32>
    %9 = vector.broadcast %8 : vector<1x32xf32> to vector<8x32xf32>
    %10 = arith.addf %7, %9 : vector<8x32xf32>
    %cst_9 = arith.constant 0.000000e+00 : f32
    %11 = vector.broadcast %cst_9 : f32 to vector<8x32xf32>
    %12 = arith.maximumf %10, %11 : vector<8x32xf32>
    %c0_10 = arith.constant 0 : index
    %c0_11 = arith.constant 0 : index
    %13 = vector.load %arg5[%c0_10, %c0_11] : memref<64x128xf32, #tpu.memory_space<vmem>>, vector<32x128xf32>
    %cst_12 = arith.constant dense<0.000000e+00> : vector<8x128xf32>
    %14 = tpu.matmul %12, %13, %cst_12 {dimension_numbers = #tpu.dot_dimension_numbers<[1], [0], [0], [1], [0, 0, 1, 1], [], []>} : vector<8x32xf32>, vector<32x128xf32>, vector<8x128xf32> -> vector<8x128xf32>
    %c32 = arith.constant 32 : index
    %c0_13 = arith.constant 0 : index
    %15 = vector.load %arg5[%c32, %c0_13] : memref<64x128xf32, #tpu.memory_space<vmem>>, vector<32x128xf32>
    %cst_14 = arith.constant dense<0.000000e+00> : vector<8x128xf32>
    %16 = tpu.matmul %5, %15, %cst_14 {dimension_numbers = #tpu.dot_dimension_numbers<[1], [0], [0], [1], [0, 0, 1, 1], [], []>} : vector<8x32xf32>, vector<32x128xf32>, vector<8x128xf32> -> vector<8x128xf32>
    %17 = arith.addf %14, %16 : vector<8x128xf32>
    %c0_15 = arith.constant 0 : index
    %c0_16 = arith.constant 0 : index
    %18 = vector.load %arg6[%c0_15, %c0_16] : memref<1x128xf32, #tpu.memory_space<vmem>>, vector<1x128xf32>
    %19 = vector.broadcast %18 : vector<1x128xf32> to vector<8x128xf32>
    %20 = arith.addf %17, %19 : vector<8x128xf32>
    %21 = vector.extract_strided_slice %20 {offsets = [0, 0], sizes = [8, 64], strides = [1, 1]} : vector<8x128xf32> to vector<8x64xf32>
    %22 = arith.negf %21 : vector<8x64xf32>
    %23 = math.exp %22 : vector<8x64xf32>
    %cst_17 = arith.constant 1.000000e+00 : f32
    %24 = vector.broadcast %cst_17 : f32 to vector<8x64xf32>
    %25 = arith.addf %24, %23 : vector<8x64xf32>
    %26 = arith.divf %24, %25 : vector<8x64xf32>
    %27 = vector.extract_strided_slice %26 {offsets = [0, 0], sizes = [8, 32], strides = [1, 1]} : vector<8x64xf32> to vector<8x32xf32>
    %28 = vector.extract_strided_slice %26 {offsets = [0, 32], sizes = [8, 32], strides = [1, 1]} : vector<8x64xf32> to vector<8x32xf32>
    %29 = vector.extract_strided_slice %20 {offsets = [0, 64], sizes = [8, 32], strides = [1, 1]} : vector<8x128xf32> to vector<8x32xf32>
    %30 = vector.extract_strided_slice %20 {offsets = [0, 96], sizes = [8, 32], strides = [1, 1]} : vector<8x128xf32> to vector<8x32xf32>
    %31 = arith.mulf %27, %30 : vector<8x32xf32>
    %32 = arith.addf %29, %31 : vector<8x32xf32>
    %33 = math.tanh %32 : vector<8x32xf32>
    %cst_18 = arith.constant 1.000000e+00 : f32
    %34 = vector.broadcast %cst_18 : f32 to vector<8x32xf32>
    %35 = arith.subf %34, %28 : vector<8x32xf32>
    %36 = arith.mulf %35, %33 : vector<8x32xf32>
    %37 = arith.mulf %28, %5 : vector<8x32xf32>
    %38 = arith.addf %36, %37 : vector<8x32xf32>
    %c0_19 = arith.constant 0 : index
    %c0_20 = arith.constant 0 : index
    %39 = vector.load %arg10[%c0_19, %c0_20] : memref<8x32xf32, #tpu.memory_space<vmem>>, vector<8x32xf32>
    tpu.vector_store %arg10[%c0_19, %c0_20], %38 {strides = array<i32>} : memref<8x32xf32, #tpu.memory_space<vmem>>, vector<8x32xf32>,
    %c0_21 = arith.constant 0 : index
    %c0_22 = arith.constant 0 : index
    %40 = vector.load %arg7[%c0_21, %c0_22] : memref<32x128xf32, #tpu.memory_space<vmem>>, vector<32x128xf32>
    %cst_23 = arith.constant dense<0.000000e+00> : vector<8x128xf32>
    %41 = tpu.matmul %38, %40, %cst_23 {dimension_numbers = #tpu.dot_dimension_numbers<[1], [0], [0], [1], [0, 0, 1, 1], [], []>} : vector<8x32xf32>, vector<32x128xf32>, vector<8x128xf32> -> vector<8x128xf32>
    %c0_24 = arith.constant 0 : index
    %c0_25 = arith.constant 0 : index
    %42 = vector.load %arg8[%c0_24, %c0_25] : memref<1x128xf32, #tpu.memory_space<vmem>>, vector<1x128xf32>
    %43 = vector.broadcast %42 : vector<1x128xf32> to vector<8x128xf32>
    %44 = arith.addf %41, %43 : vector<8x128xf32>
    %c0_26 = arith.constant 0 : index
    %c0_27 = arith.constant 0 : index
    %c0_28 = arith.constant 0 : index
    %45 = vector.load %arg9[%c0_26, %c0_27, %c0_28] : memref<1x8x128xf32, #tpu.memory_space<vmem>>, vector<1x8x128xf32>
    %46 = vector.shape_cast %45 : vector<1x8x128xf32> to vector<8x128xf32>
    %47 = vector.shape_cast %44 : vector<8x128xf32> to vector<1x8x128xf32>
    tpu.vector_store %arg9[%c0_26, %c0_27, %c0_28], %47 {strides = array<i32>} : memref<1x8x128xf32, #tpu.memory_space<vmem>>, vector<1x8x128xf32>,
    return
  }
  func.func @transform_0(%arg0: i32) -> (i32, i32, i32) {
    %c0_i32 = arith.constant 0 : i32
    %c0_i32_0 = arith.constant 0 : i32
    %c0_i32_1 = arith.constant 0 : i32
    return %arg0, %c0_i32, %c0_i32_0 : i32, i32, i32
  }
  func.func @transform_1(%arg0: i32) -> (i32, i32) {
    %c0_i32 = arith.constant 0 : i32
    %c0_i32_0 = arith.constant 0 : i32
    %c0_i32_1 = arith.constant 0 : i32
    return %c0_i32, %c0_i32_0 : i32, i32
  }
  func.func @transform_2(%arg0: i32) -> (i32, i32) {
    %c0_i32 = arith.constant 0 : i32
    %c0_i32_0 = arith.constant 0 : i32
    %c0_i32_1 = arith.constant 0 : i32
    return %c0_i32, %c0_i32_0 : i32, i32
  }
  func.func @transform_3(%arg0: i32) -> (i32, i32) {
    %c0_i32 = arith.constant 0 : i32
    %c0_i32_0 = arith.constant 0 : i32
    %c0_i32_1 = arith.constant 0 : i32
    return %c0_i32, %c0_i32_0 : i32, i32
  }
  func.func @transform_4(%arg0: i32) -> (i32, i32) {
    %c0_i32 = arith.constant 0 : i32
    %c0_i32_0 = arith.constant 0 : i32
    %c0_i32_1 = arith.constant 0 : i32
    return %c0_i32, %c0_i32_0 : i32, i32
  }
  func.func @transform_5(%arg0: i32) -> (i32, i32) {
    %c0_i32 = arith.constant 0 : i32
    %c0_i32_0 = arith.constant 0 : i32
    %c0_i32_1 = arith.constant 0 : i32
    return %c0_i32, %c0_i32_0 : i32, i32
  }
  func.func @transform_6(%arg0: i32) -> (i32, i32) {
    %c0_i32 = arith.constant 0 : i32
    %c0_i32_0 = arith.constant 0 : i32
    %c0_i32_1 = arith.constant 0 : i32
    return %c0_i32, %c0_i32_0 : i32, i32
  }
  func.func @transform_7(%arg0: i32) -> (i32, i32) {
    %c0_i32 = arith.constant 0 : i32
    %c0_i32_0 = arith.constant 0 : i32
    %c0_i32_1 = arith.constant 0 : i32
    return %c0_i32, %c0_i32_0 : i32, i32
  }
  func.func @transform_8(%arg0: i32) -> (i32, i32, i32) {
    %c0_i32 = arith.constant 0 : i32
    %c0_i32_0 = arith.constant 0 : i32
    %c0_i32_1 = arith.constant 0 : i32
    return %arg0, %c0_i32, %c0_i32_0 : i32, i32, i32
  }
}

</mosaic_0001>

<bundles_post_ra>
// kernel: tpu_custom_call.1
= control target key start
LH: loop header
LB: loop body
LE: loop exit
PB: predicated region body
PF: predicated region fallthrough
CT: control target
= control target key end

     0   :  { %13 = vsyncpa [#allocation4], 0  ;;  %s810_s0 = inlined_call_operand.hbm [shape: f32[1,8,48], index: 0, kind: input, shape index: {}]   ;;  %s811_s1 = inlined_call_operand.hbm [shape: f32[8,32], index: 1, kind: input, shape index: {}]   ;;  %s812_s2 = inlined_call_operand.vmem [shape: f32[48,32], index: 2, kind: input, shape index: {}]   ;;  %s813_s3 = inlined_call_operand.vmem [shape: f32[1,32], index: 3, kind: input, shape index: {}]   ;;  %s814_s4 = inlined_call_operand.vmem [shape: f32[64,128], index: 4, kind: input, shape index: {}]   ;;  %s815_s5 = inlined_call_operand.vmem [shape: f32[1,128], index: 5, kind: input, shape index: {}]   ;;  %s816_s6 = inlined_call_operand.vmem [shape: f32[32,128], index: 6, kind: input, shape index: {}]   ;;  %s817_s7 = inlined_call_operand.vmem [shape: f32[1,128], index: 7, kind: input, shape index: {}]   ;;  %s818_s8 = inlined_call_operand.hbm [shape: f32[1,8,128], index: 8, kind: output, shape index: {}]  }
   0x1   :  { %14 = vsyncpa [#allocation7], 0 }
   0x2   :  { %15 = vsyncpa [#allocation5], 0  ;;  %s639_s27 = smov [#allocation3]   ;;  %s640_s29 = smov [#allocation6]  }
   0x3   :  { %s22_s28 = sshll.u32 %s639_s27, 4  ;;  %s32_s30 = sshll.u32 %s640_s29, 4  ;;  %s23_s28 = int_to_ptr.vmem [resolvable:$true] %s22_s28  ;;  %s33_s30 = int_to_ptr.vmem [resolvable:$true] %s32_s30 }
   0x4   :  { %s567_s11 = scalar_lea.hbm %s810_s0, 128 }
   0x5   :  { %p568_p0 = scmp.ne.s32.totalorder %s810_s0, %s567_s11  ;;  %p571_p1 = scmp.lt.u32.totalorder %s567_s11, %s810_s0 }
   0x7   :  { %p573_p2 = pnand %p571_p1, %p568_p0 }
   0x9   :  { %576 = shalt.err (!%p573_p2)
}
   0xa   :  { %s577_s16 = scalar_lea.vmem %s23_s28, 128  ;;  %p582_p4 = scmp.lt.s32.totalorder %s23_s28, %s23_s28 }
   0xb   :  { %p578_p3 = scmp.ne.s32.totalorder %s23_s28, %s577_s16  ;;  %p583_p5 = scmp.lt.s32.totalorder %s577_s16, %s577_s16 }
   0xd   :  { %p584_p6 = por %p583_p5, %p582_p4 }
   0xf   :  { %p585_p7 = pnand %p584_p6, %p578_p3 }
  0x11   :  { %588 = shalt.err (!%p585_p7)
}
  0x12   :  { %25 = dma.hbm_to_vmem [thread:$0]  %s810_s0, 128, %s23_s28, [#allocation4]  }
  0x13   :  { %s589_s21 = scalar_lea.hbm %s811_s1, 128 }
  0x14   :  { %p590_p8 = scmp.ne.s32.totalorder %s811_s1, %s589_s21  ;;  %p593_p9 = scmp.lt.u32.totalorder %s589_s21, %s811_s1 }
  0x16   :  { %p595_p10 = pnand %p593_p9, %p590_p8 }
  0x18   :  { %598 = shalt.err (!%p595_p10)
}
  0x19   :  { %s599_s26 = scalar_lea.vmem %s33_s30, 128  ;;  %p604_p12 = scmp.lt.s32.totalorder %s33_s30, %s33_s30 }
  0x1a   :  { %p600_p11 = scmp.ne.s32.totalorder %s33_s30, %s599_s26  ;;  %p605_p13 = scmp.lt.s32.totalorder %s599_s26, %s599_s26 }
  0x1c   :  { %p606_p0 = por %p605_p13, %p604_p12 }
  0x1e   :  { %p607_p1 = pnand %p606_p0, %p600_p11 }
  0x20   :  { %610 = shalt.err (!%p607_p1)
}
  0x21   :  { %35 = dma.hbm_to_vmem [thread:$0]  %s811_s1, 128, %s33_s30, [#allocation7]  }
  0x22   :  { %633 = dma.done.wait [#allocation4], 128  }
  0x23   :  { %634 = vsyncadd [#allocation4], 4294967168 }
  0x24   :  { %635 = dma.done.wait [#allocation7], 128  }
  0x25   :  { %636 = vsyncadd [#allocation7], 4294967168  ;;  %v641_v0 = vmov 0.0|0.0   ;;  %vm642_vm0 = vmmov 0   ;;  %v643_v1 = vmov 0.0   ;;  %v63_v2 = vld [vmem:[%s812_s2] sm:$0xff] }
  0x26   :  { %525 = vmatprep.subr.bf16.mxu0 %v641_v0  ;;  %489 = vmatprep.mubr.msk.f32.mxu0 %vm642_vm0, %v643_v1  ;;  %v64_v3 = vld [vmem:[%s812_s2 + $0x8] sm:$0xff]  ;;  %v65_v4 = vld [vmem:[%s812_s2 + $0x10] sm:$0xff]  ;;  %v66_v6 = vld [vmem:[%s812_s2 + $0x18] sm:$0xff]  ;;  %vm59_vm1 = vcmask 261120   ;;  %vm76_vm2 = vcmask 392192   ;;  %s646_s19 = smov 96  }
  0x27   :  { %534 = vmatprep.subr.bf16.mxu1 %v641_v0  ;;  %500 = vmatprep.mubr.msk.f32.mxu1 %vm642_vm0, %v643_v1  ;;  %v526_v5 = vpack.c.bf16 %v64_v3, %v63_v2  ;;  %v155_v7 = vld [vmem:[%s814_s4 + $0x20] sm:$0xff]  ;;  %v156_v8 = vld [vmem:[%s814_s4 + $0x28] sm:$0xff]  ;;  %v529_v9 = vpack.c.bf16 %v66_v6, %v65_v4  ;;  %v157_v11 = vld [vmem:[%s814_s4 + $0x30] sm:$0xff]  ;;  %s647_s21 = smov [#allocation8]  }
  0x28   :  { %v535_v10 = vpack.c.bf16 %v156_v8, %v155_v7  ;;  %v158_v12 = vld [vmem:[%s814_s4 + $0x38] sm:$0xff]  ;;  %v58_v13 = vld [vmem:[#allocation6] sm:$0xff]  ;;  %v67_v14 = vld [vmem:[%s812_s2 + $0x20] sm:$0xff]  ;;  %s437_s22 = sshll.u32 %s647_s21, 4  ;;  %s438_s22 = int_to_ptr.vmem [resolvable:$true] %s437_s22 }
  0x29   :  { %527 = vmatpush3.bf16.msra.mxu0 %v526_v5  ;;  %v68_v15 = vld [vmem:[%s812_s2 + $0x28] sm:$0xff]  ;;  %60 = vst.msk [vmem:[#allocation2] sm:$0xff] %vm59_vm1, %v58_v13  ;;  %v538_v16 = vpack.c.bf16 %v158_v12, %v157_v11  ;;  %v151_v17 = vld [vmem:[%s814_s4] sm:$0xff]  ;;  %v153_v23 = vld [vmem:[%s814_s4 + $0x10] sm:$0xff]  ;;  %s611_s23 = scalar_lea.vmem %s438_s22, 128  ;;  %p616_p3 = scmp.lt.s32.totalorder %s438_s22, %s438_s22 }
  0x2a   :  { %528 = vmatprep.subr.bf16.mxu0 %v641_v0  ;;  %536 = vmatpush3.bf16.msra.mxu1 %v535_v10  ;;  %v152_v18 = vld [vmem:[%s814_s4 + $0x8] sm:$0xff]  ;;  %v532_v19 = vpack.c.bf16 %v68_v15, %v67_v14  ;;  %v154_v24 = vld [vmem:[%s814_s4 + $0x18] sm:$0xff]  ;;  %v447_v26 = vld [vmem:[%s813_s3] ss:$0 sm:$0xff]  ;;  %s644_s4 = smov 32   ;;  %s645_s3 = smov 64  }
  0x2b   :  { %537 = vmatprep.subr.bf16.mxu1 %v641_v0  ;;  %v541_v20 = vpack.c.bf16 %v152_v18, %v151_v17  ;;  %v61_v21 = vld [vmem:[#allocation3] sm:$0xff]  ;;  %v544_v25 = vpack.c.bf16 %v154_v24, %v153_v23  ;;  %v451_v34 = vld [vmem:[%s815_s5] ss:$0 sm:$0xff]  ;;  %v349_v48 = vld [vmem:[%s816_s6 + $0x10] sm:$0xff]  ;;  %p612_p2 = scmp.ne.s32.totalorder %s438_s22, %s611_s23  ;;  %p617_p4 = scmp.lt.s32.totalorder %s611_s23, %s611_s23 }
  0x2c   :  { %v347_v46 = vld [vmem:[%s816_s6] sm:$0xff]  ;;  %v348_v47 = vld [vmem:[%s816_s6 + $0x8] sm:$0xff]  ;;  %v350_v50 = vld [vmem:[%s816_s6 + $0x18] sm:$0xff] }
  0x2d   :  { %530 = vmatpush3.bf16.msra.mxu0 %v529_v9  ;;  %v547_v49 = vpack.c.bf16 %v348_v47, %v347_v46  ;;  %v550_v51 = vpack.c.bf16 %v350_v50, %v349_v48  ;;  %v453_v60 = vld [vmem:[%s817_s7] ss:$0 sm:$0xff]  ;;  %p618_p5 = por %p617_p4, %p616_p3 }
  0x2e   :  { %531 = vmatprep.subr.bf16.mxu0 %v641_v0  ;;  %539 = vmatpush3.bf16.msra.mxu1 %v538_v16 }
  0x2f   :  { %540 = vmatprep.subr.bf16.mxu1 %v641_v0  ;;  %p619_p6 = pnand %p618_p5, %p612_p2 }
  0x30   :  { %v62_v22 = vld [vmem:[#allocation2] sm:$0xff] }
  0x31   :  { %533 = vmatpush3.bf16.msra.mxu0 %v532_v19  ;;  %501 = vmatmul.mubr.msk.f32.vlgmr.msra.gmra.mrb[0].mxu1 %vm59_vm1, %v62_v22 }
  0x32   :  { %546 = vmatprep.subr.bf16.mxu0 %v641_v0  ;;  %542 = vmatpush3.bf16.msra.mxu1 %v541_v20 }
  0x33   :  { %511 = vmatprep.mubr.msk.f32.mxu1 %vm642_vm0, %v643_v1  ;;  %543 = vmatprep.subr.bf16.mxu1 %v641_v0 }
  0x34   :  { %490 = vmatmul.mubr.msk.f32.vlgmr.msra.gmra.mrb[0].mxu0 %vm76_vm2, %v61_v21 }
  0x35   :  { %522 = vmatprep.mubr.msk.f32.mxu0 %vm642_vm0, %v643_v1  ;;  %548 = vmatpush3.bf16.msra.mxu0 %v547_v49 }
  0x36   :  { %545 = vmatpush3.bf16.msra.mxu1 %v544_v25  ;;  %549 = vmatprep.subr.bf16.mxu0 %v641_v0 }
  0x39   :  { %551 = vmatpush3.bf16.msra.mxu0 %v550_v51 }
 0x104   :  { %v229_v27 = vpop.f32.mrb[0].mxu1 }
 0x105   :  { %v502_v28 = vpop.f32.mrb[1].mxu1 }
 0x107   :  { %v146_v29 = vpop.f32.mrb[0].mxu0 }
 0x108   :  { %v147_v30 = vadd.f32 %v447_v26, %v146_v29  ;;  %v491_v31 = vpop.f32.mrb[1].mxu0 }
 0x10a   :  { %v150_v32 = vmax.f32 %v147_v30, 0.0 }
 0x10c   :  { %512 = vmatmul.mubr.msk.f32.vlgmr.msra.gmra.mrb[2].mxu1 %vm59_vm1, %v150_v32 }
 0x1df   :  { %v302_v33 = vpop.f32.mrb[2].mxu1 }
 0x1e0   :  { %v303_v35 = vadd.f32 %v302_v33, %v229_v27  ;;  %v513_v36 = vpop.f32.mrb[3].mxu1 }
 0x1e2   :  { %v313_v37 = vadd.f32 %v451_v34, %v303_v35 }
 0x1e4   :  { %321 = vrot.lane.b32.xlu0 %v313_v37, %s644_s4  ;;  %v452_v38 = vmul.f32 -1.442695, %v313_v37 }
 0x1e6   :  { %561 = vpow2.f32 %v452_v38 }
 0x1f0   :  { %v562_v39 = vpop.eup %561 }
 0x1f1   :  { %v317_v40 = vadd.f32 1.0, %v562_v39 }
 0x1f3   :  { %563 = vrcp.f32 %v317_v40 }
 0x1fd   :  { %v564_v41 = vpop.eup %563 }
 0x1fe   :  { %v331_v54 = vsub.f32 1.0, %v564_v41 }
 0x256   :  { %v322_v42 = vpop.permute.xlu0 %321 }
 0x257   :  { %v324_v43 = vmul.f32 %v564_v41, %v322_v42 }
 0x259   :  { %326 = vrot.lane.b32.xlu0 %v324_v43, %s645_s3 }
 0x2cb   :  { %v327_v44 = vpop.permute.xlu0 %326 }
 0x2cc   :  { %v329_v45 = vadd.f32 %v327_v44, %v313_v37 }
 0x2ce   :  { %565 = vtanh.f32 %v329_v45 }
 0x2d8   :  { %v566_v52 = vpop.eup %565 }
 0x2d9   :  { %333 = vrot.lane.b32.xlu1 %v566_v52, %s646_s19 }
 0x2dd   :  { %337 = vrot.lane.b32.xlu1 %v62_v22, %s644_s4 }
 0x34b   :  { %v334_v53 = vpop.permute.xlu1 %333 }
 0x34c   :  { %v336_v56 = vmul.f32 %v334_v53, %v331_v54 }
 0x34f   :  { %v338_v55 = vpop.permute.xlu1 %337 }
 0x350   :  { %v340_v57 = vmul.f32 %v564_v41, %v338_v55 }
 0x352   :  { %v341_v58 = vadd.f32 %v340_v57, %v336_v56 }
 0x354   :  { %343 = vrot.lane.b32.xlu0 %v341_v58, %s646_s19 }
 0x3c6   :  { %v344_v59 = vpop.permute.xlu0 %343 }
 0x3c7   :  { %346 = vst.msk [vmem:[#allocation2] sm:$0xff] %vm59_vm1, %v344_v59  ;;  %523 = vmatmul.mubr.msk.f32.vlgmr.msra.gmra.mrb[2].mxu0 %vm59_vm1, %v344_v59 }
 0x49a   :  { %v426_v61 = vpop.f32.mrb[2].mxu0 }
 0x49b   :  { %v427_v62 = vadd.f32 %v453_v60, %v426_v61  ;;  %v524_v63 = vpop.f32.mrb[3].mxu0 }
 0x49d   :  { %430 = vst [vmem:[#allocation8] sm:$0xff] %v427_v62 }
 0x49e   :  { %622 = shalt.err (!%p619_p6)
}
 0x49f   :  { %s623_s26 = scalar_lea.hbm %s818_s8, 128 }
 0x4a0   :  { %p624_p7 = scmp.ne.s32.totalorder %s818_s8, %s623_s26  ;;  %p627_p8 = scmp.lt.u32.totalorder %s623_s26, %s818_s8 }
 0x4a2   :  { %p629_p9 = pnand %p627_p8, %p624_p7 }
 0x4a4   :  { %632 = shalt.err (!%p629_p9)
}
 0x4a5   :  { %440 = dma.vmem_to_hbm [thread:$0]  %s438_s22, 128, %s818_s8, [#allocation5]  }
 0x4a6   :  { %637 = dma.done.wait [#allocation5], 128  }
 0x4a7   :  { %638 = vsyncadd [#allocation5], 4294967168 }
 0x4a8   :  { %444 = vsyncpa [#allocation4], 1 }
 0x4a9   :  { %445 = vsyncpa [#allocation7], 1 }
 0x4aa   :  { %446 = vsyncpa [#allocation5], 1 }

</bundles_post_ra>
